<compile_context>
chip_gen: v6e
topology: v6e:2x2x1
jax: 0.10.0
libtpu: 0.0.40
codegen_flags: <defaults>
</compile_context>

<pallas_src>
import functools
import math

import jax
import jax.numpy as jnp
from jax.experimental import pallas as pl
from jax.experimental.pallas import tpu as pltpu


def _kld_sum_kernel(mu_ref, lv_ref, out_ref, acc_ref, *, valid_rows, block_rows):
    """Accumulate sum(1 + logvar - mu^2 - exp(logvar)) over one (TB, L) tile."""
    k = pl.program_id(0)

    @pl.when(k == 0)
    def _():
        acc_ref[...] = jnp.zeros_like(acc_ref)

    mu = mu_ref[...].astype(jnp.float32)
    lv = lv_ref[...].astype(jnp.float32)
    # Elementwise hot path (VPU + EUP): 1 + logvar - mu^2 - exp(logvar)
    term = 1.0 + lv - mu * mu - jnp.exp(lv)

    # Ragged edge block: rows >= valid_rows hold *unspecified* DMA padding and
    # must be masked before the reduce.  `valid_rows % block_rows` is static,
    # so the mask is only emitted when an edge block actually exists.
    if valid_rows % block_rows != 0:
        row = jax.lax.broadcasted_iota(jnp.int32, term.shape, 0) + k * block_rows
        term = jnp.where(row < valid_rows, term, 0.0)

    # Sublane-only reduce into a lane-parallel f32 VMEM accumulator.
    acc_ref[...] += jnp.sum(term, axis=0, keepdims=True)

    @pl.when(k == pl.num_programs(0) - 1)
    def _():
        # Single cross-lane reduce + single scalar store (through SMEM).
        out_ref[0, 0] = jnp.sum(acc_ref[...])


def kld_loss(mu, logvar, *, target_block_bytes=4 << 20, buffer_count=3):
    """Pallas KLD loss.  mu/logvar: (B, ...) arrays of identical shape."""
    assert mu.shape == logvar.shape, "mu and logvar must have identical shapes"
    assert mu.ndim >= 1
    B = int(mu.shape[0])
    N = int(math.prod(mu.shape))
    itemsize = jnp.dtype(mu.dtype).itemsize

    # ---- Layout: lane-dense (rows of 128) whenever the flatten is free. ----
    if N % 128 == 0:
        L = 128
        R = N // 128
    else:
        # Fallback: full trailing dim on the lane axis (correct for any D).
        # TODO(synk): for huge D that is not a multiple of 128, the last dim
        # would also need tiling; typical VAE latent dims never hit this.
        L = max(1, N // B)
        R = B
    mu2 = mu.reshape(R, L)
    lv2 = logvar.reshape(R, L)

    # ---- Row tile: ~target_block_bytes per input block, multiple of 8 rows.
    # Cap the per-block budget so 2 inputs x buffer_count x block stays well
    # under ~40 MiB (leaves headroom inside v7x's 64 MiB per-TC VMEM).
    eff_target = min(int(target_block_bytes), (40 << 20) // (2 * buffer_count))
    rows_per_block = max(8, (eff_target // max(1, L * itemsize)) // 8 * 8)
    if rows_per_block >= R:
        tb = R            # single full-extent block (any row count allowed)
        nk = 1
    else:
        tb = rows_per_block          # multiple of 8; last block may be ragged
        nk = pl.cdiv(R, tb)

    # ---- VMEM plan derived from the actual footprint (not hardcoded). ----
    block_bytes = tb * L * itemsize
    acc_bytes = L * 4
    footprint = 2 * buffer_count * block_bytes + acc_bytes
    vmem_limit = int(min(max(footprint * 5 // 4 + (1 << 20), 16 << 20), 48 << 20))

    index_map = lambda k: (k, 0)
    if nk >= 3:
        # Deepen the pipeline on a pure streaming kernel to hide DMA jitter.
        in_specs = [
            pl.BlockSpec((tb, L), index_map, pipeline_mode=pl.Buffered(buffer_count)),
            pl.BlockSpec((tb, L), index_map, pipeline_mode=pl.Buffered(buffer_count)),
        ]
    else:
        in_specs = [
            pl.BlockSpec((tb, L), index_map),
            pl.BlockSpec((tb, L), index_map),
        ]

    total = pl.pallas_call(
        functools.partial(_kld_sum_kernel, valid_rows=R, block_rows=tb),
        out_shape=jax.ShapeDtypeStruct((1, 1), jnp.float32),
        grid_spec=pltpu.PrefetchScalarGridSpec(
            num_scalar_prefetch=0,
            grid=(nk,),
            in_specs=in_specs,
            # Scalar result through SMEM: canonical cheap path, keeps the
            # output off the vector-store slot entirely.
            out_specs=pl.BlockSpec(memory_space=pltpu.MemorySpace.SMEM),
            scratch_shapes=[pltpu.VMEM((1, L), jnp.float32)],
        ),
        compiler_params=pltpu.CompilerParams(
            dimension_semantics=("arbitrary",),
            vmem_limit_bytes=vmem_limit,
        ),
    )(mu2, lv2)

    # Finalize in the wrapper: -0.5 / B scaling with the *original* batch size.
    return total[0, 0] * (-0.5 / B)


def kld_loss_ref(mu, logvar):
    B = logvar.shape[0]
    mu = mu.astype(jnp.float32)
    lv = logvar.astype(jnp.float32)
    return -0.5 * jnp.sum(1.0 + lv - mu * mu - jnp.exp(lv)) / B


if __name__ == "__main__":
    key = jax.random.PRNGKey(0)
    k1, k2, k3, k4, k5, k6, k7, k8 = jax.random.split(key, 8)

    # 1) Lane-dense path (B*D % 128 == 0), single block.
    B, D = 16, 128
    mu = jax.random.normal(k1, (B, D), dtype=jnp.float32)
    logvar = 0.1 * jax.random.normal(k2, (B, D), dtype=jnp.float32)
    out = kld_loss(mu, logvar)
    jax.block_until_ready(out)
    ref = kld_loss_ref(mu, logvar)
    assert jnp.allclose(out, ref, rtol=1e-5, atol=1e-4), (out, ref)

    # 2) Lane-dense path with many grid steps + ragged (masked) last block +
    #    Buffered(3): force a tiny block so the accumulate/mask path is hit.
    B2, D2 = 50, 64                      # N = 3200 -> (25, 128), 25 % 8 != 0
    mu2 = jax.random.normal(k3, (B2, D2), dtype=jnp.float32)
    logvar2 = 0.1 * jax.random.normal(k4, (B2, D2), dtype=jnp.float32)
    out2 = kld_loss(mu2, logvar2, target_block_bytes=4096)
    jax.block_until_ready(out2)
    ref2 = kld_loss_ref(mu2, logvar2)
    assert jnp.allclose(out2, ref2, rtol=1e-5, atol=1e-4), (out2, ref2)

    # 3) Fallback path (D not a multiple of 128), bf16 inputs, unaligned shape.
    B3, D3 = 6, 33
    mu3 = jax.random.normal(k5, (B3, D3), dtype=jnp.bfloat16)
    logvar3 = (0.1 * jax.random.normal(k6, (B3, D3))).astype(jnp.bfloat16)
    out3 = kld_loss(mu3, logvar3)
    jax.block_until_ready(out3)
    ref3 = kld_loss_ref(mu3, logvar3)
    assert jnp.allclose(out3, ref3, rtol=1e-3, atol=1e-3), (out3, ref3)

    # 4) N-D latent (3D), fallback path — exercises the general reshape.
    B4 = 3
    mu4 = jax.random.normal(k7, (B4, 4, 40), dtype=jnp.float32)
    logvar4 = 0.1 * jax.random.normal(k8, (B4, 4, 40), dtype=jnp.float32)
    out4 = kld_loss(mu4, logvar4)
    jax.block_until_ready(out4)
    ref4 = kld_loss_ref(mu4, logvar4)
    assert jnp.allclose(out4, ref4, rtol=1e-5, atol=1e-4), (out4, ref4)

    print("KERNEL_OK")
</pallas_src>

<mosaic_0001>
module attributes {stable_mosaic.version = 11 : i64} {
  func.func @_kld_sum_kernel(%arg0: i32, %arg1: memref<16x128xf32, #tpu.memory_space<vmem>>, %arg2: memref<16x128xf32, #tpu.memory_space<vmem>>, %arg3: memref<1x1xf32, #tpu.memory_space<smem>>, %arg4: memref<1x128xf32, #tpu.memory_space<vmem>>) attributes {dimension_semantics = [#tpu.dimension_semantics<arbitrary>], iteration_bounds = array<i64: 1>, scalar_prefetch = 0 : i64, scratch_operands = 1 : i64, tpu.core_type = #tpu.core_type<tc>, window_params = [{transform_indices = @transform_0, window_bounds = array<i64: 16, 128>}, {transform_indices = @transform_1, window_bounds = array<i64: 16, 128>}, {transform_indices = @transform_2, window_bounds = array<i64: 1, 1>}]} {
    %c0_i32 = arith.constant 0 : i32
    %0 = arith.cmpi eq, %arg0, %c0_i32 : i32
    %1 = arith.extui %0 : i1 to i32
    %c0_i32_0 = arith.constant 0 : i32
    %2 = arith.cmpi ne, %1, %c0_i32_0 : i32
    scf.if %2 {
      %cst_11 = arith.constant 0.000000e+00 : f32
      %19 = vector.broadcast %cst_11 : f32 to vector<1x128xf32>
      %c0_12 = arith.constant 0 : index
      %c0_13 = arith.constant 0 : index
      %20 = vector.load %arg4[%c0_12, %c0_13] : memref<1x128xf32, #tpu.memory_space<vmem>>, vector<1x128xf32>
      tpu.vector_store %arg4[%c0_12, %c0_13], %19 {strides = array<i32>} : memref<1x128xf32, #tpu.memory_space<vmem>>, vector<1x128xf32>,
    } else {
    }
    %c0 = arith.constant 0 : index
    %c0_1 = arith.constant 0 : index
    %3 = vector.load %arg1[%c0, %c0_1] : memref<16x128xf32, #tpu.memory_space<vmem>>, vector<16x128xf32>
    %c0_2 = arith.constant 0 : index
    %c0_3 = arith.constant 0 : index
    %4 = vector.load %arg2[%c0_2, %c0_3] : memref<16x128xf32, #tpu.memory_space<vmem>>, vector<16x128xf32>
    %cst = arith.constant 1.000000e+00 : f32
    %5 = vector.broadcast %cst : f32 to vector<16x128xf32>
    %6 = arith.addf %5, %4 : vector<16x128xf32>
    %7 = arith.mulf %3, %3 : vector<16x128xf32>
    %8 = arith.subf %6, %7 : vector<16x128xf32>
    %9 = math.exp %4 : vector<16x128xf32>
    %10 = arith.subf %8, %9 : vector<16x128xf32>
    %c0_4 = arith.constant 0 : index
    %c0_5 = arith.constant 0 : index
    %11 = vector.load %arg4[%c0_4, %c0_5] : memref<1x128xf32, #tpu.memory_space<vmem>>, vector<1x128xf32>
    %cst_6 = arith.constant dense<0.000000e+00> : vector<128xf32>
    %12 = vector.multi_reduction <add>, %10, %cst_6 [0] : vector<16x128xf32> to vector<128xf32>
    %13 = vector.shape_cast %12 : vector<128xf32> to vector<1x128xf32>
    %14 = arith.addf %11, %13 : vector<1x128xf32>
    %c0_7 = arith.constant 0 : index
    %c0_8 = arith.constant 0 : index
    %15 = vector.load %arg4[%c0_7, %c0_8] : memref<1x128xf32, #tpu.memory_space<vmem>>, vector<1x128xf32>
    tpu.vector_store %arg4[%c0_7, %c0_8], %14 {strides = array<i32>} : memref<1x128xf32, #tpu.memory_space<vmem>>, vector<1x128xf32>,
    %c0_i32_9 = arith.constant 0 : i32
    %16 = arith.cmpi eq, %arg0, %c0_i32_9 : i32
    %17 = arith.extui %16 : i1 to i32
    %c0_i32_10 = arith.constant 0 : i32
    %18 = arith.cmpi ne, %17, %c0_i32_10 : i32
    scf.if %18 {
      %c0_11 = arith.constant 0 : index
      %c0_12 = arith.constant 0 : index
      %19 = vector.load %arg4[%c0_11, %c0_12] : memref<1x128xf32, #tpu.memory_space<vmem>>, vector<1x128xf32>
      %20 = vector.shape_cast %19 : vector<1x128xf32> to vector<1x1x128xf32>
      %cst_13 = arith.constant dense<0.000000e+00> : vector<1xf32>
      %21 = vector.multi_reduction <add>, %20, %cst_13 [1, 2] : vector<1x1x128xf32> to vector<1xf32>
      %22 = vector.shape_cast %21 : vector<1xf32> to vector<1x1x1xf32>
      %23 = vector.extract %22[0, 0, 0] : f32 from vector<1x1x1xf32>
      %c0_14 = arith.constant 0 : index
      %c0_15 = arith.constant 0 : index
      %24 = memref.load %arg3[%c0_14, %c0_15] : memref<1x1xf32, #tpu.memory_space<smem>>
      memref.store %23, %arg3[%c0_14, %c0_15] : memref<1x1xf32, #tpu.memory_space<smem>>
    } else {
    }
    return
  }
  func.func @transform_0(%arg0: i32) -> (i32, i32) {
    %c0_i32 = arith.constant 0 : i32
    %c0_i32_0 = arith.constant 0 : i32
    return %arg0, %c0_i32 : i32, i32
  }
  func.func @transform_1(%arg0: i32) -> (i32, i32) {
    %c0_i32 = arith.constant 0 : i32
    %c0_i32_0 = arith.constant 0 : i32
    return %arg0, %c0_i32 : i32, i32
  }
  func.func @transform_2(%arg0: i32) -> (i32, i32) {
    %c0_i32 = arith.constant 0 : i32
    %c0_i32_0 = arith.constant 0 : i32
    %c0_i32_1 = arith.constant 0 : i32
    return %c0_i32, %c0_i32_0 : i32, i32
  }
}

</mosaic_0001>

<bundles_post_ra>
// kernel: tpu_custom_call.1
= control target key start
LH: loop header
LB: loop body
LE: loop exit
PB: predicated region body
PF: predicated region fallthrough
CT: control target
= control target key end

     0   :  { %7 = vsyncpa [#allocation4], 0  ;;  %s199_s0 = inlined_call_operand.hbm [shape: f32[16,128], index: 0, kind: input, shape index: {}]   ;;  %s200_s1 = inlined_call_operand.hbm [shape: f32[16,128], index: 1, kind: input, shape index: {}]   ;;  %s201_s2 = inlined_call_operand.hbm [shape: f32[1,1], index: 2, kind: output, shape index: {}]  }
   0x1   :  { %8 = vsyncpa [#allocation7], 0 }
   0x2   :  { %9 = vsyncpa [#allocation5], 0  ;;  %s169_s9 = smov [#allocation3]  }
   0x3   :  { %s15_s10 = sshll.u32 %s169_s9, 4  ;;  %s16_s10 = int_to_ptr.vmem [resolvable:$true] %s15_s10 }
   0x4   :  { %s123_s11 = scalar_lea.vmem %s16_s10, 256  ;;  %p128_p1 = scmp.lt.s32.totalorder %s16_s10, %s16_s10 }
   0x5   :  { %p124_p0 = scmp.ne.s32.totalorder %s16_s10, %s123_s11  ;;  %p129_p2 = scmp.lt.s32.totalorder %s123_s11, %s123_s11 }
   0x7   :  { %p130_p3 = por %p129_p2, %p128_p1 }
   0x9   :  { %p131_p4 = pnand %p130_p3, %p124_p0 }
   0xb   :  { %134 = shalt.err (!%p131_p4)
}
   0xc   :  { %s170_s12 = smov 128   ;;  %s171_s13 = smov 8  }
   0xd   :  { %21 = dma.hbm_to_vmem [thread:$0]  %s199_s0, 256, %s16_s10, [#allocation4], %s170_s12, %s170_s12, %s171_s13  }
   0xe   :  { %s172_s16 = smov [#allocation6]  }
   0xf   :  { %s27_s17 = sshll.u32 %s172_s16, 4  ;;  %s28_s17 = int_to_ptr.vmem [resolvable:$true] %s27_s17 }
  0x10   :  { %s143_s18 = scalar_lea.vmem %s28_s17, 256  ;;  %p148_p6 = scmp.lt.s32.totalorder %s28_s17, %s28_s17 }
  0x11   :  { %p144_p5 = scmp.ne.s32.totalorder %s28_s17, %s143_s18  ;;  %p149_p7 = scmp.lt.s32.totalorder %s143_s18, %s143_s18 }
  0x13   :  { %p150_p8 = por %p149_p7, %p148_p6 }
  0x15   :  { %p151_p9 = pnand %p150_p8, %p144_p5 }
  0x17   :  { %154 = shalt.err (!%p151_p9)
}
  0x18   :  { %33 = dma.hbm_to_vmem [thread:$0]  %s200_s1, 256, %s28_s17, [#allocation7], %s170_s12, %s170_s12, %s171_s13  }
  0x19   :  { %163 = dma.done.wait [#allocation4], 256  }
  0x1a   :  { %164 = vsyncadd [#allocation4], 4294967040 }
  0x1b   :  { %165 = dma.done.wait [#allocation7], 256  }
  0x1c   :  { %166 = vsyncadd [#allocation7], 4294967040  ;;  %v173_v0 = vmov 0.0   ;;  %v47_v1 = vld [vmem:[#allocation6] sm:$0xff]  ;;  %v48_v2 = vld [vmem:[#allocation6 + $0x8] sm:$0xff]  ;;  %vm75_vm0 = vcmask 1040384  }
  0x1d   :  { %44 = vst [vmem:[#allocation2] sm:$0x1] %v173_v0  ;;  %v55_v3 = vmul.f32 1.442695, %v47_v1  ;;  %v57_v4 = vmul.f32 1.442695, %v48_v2 }
  0x1e   :  { %v45_v5 = vld [vmem:[#allocation3] sm:$0xff]  ;;  %v46_v6 = vld [vmem:[#allocation3 + $0x8] sm:$0xff]  ;;  %v49_v7 = vadd.f32 1.0, %v47_v1  ;;  %v50_v9 = vadd.f32 1.0, %v48_v2  ;;  %s174_s1 = smov [#allocation8]  }
  0x1f   :  { %111 = vpow2.f32 %v55_v3  ;;  %v51_v8 = vmul.f32 %v45_v5, %v45_v5  ;;  %v52_v10 = vmul.f32 %v46_v6, %v46_v6 }
  0x20   :  { %113 = vpow2.f32 %v57_v4 }
  0x21   :  { %v53_v11 = vsub.f32 %v49_v7, %v51_v8  ;;  %v54_v12 = vsub.f32 %v50_v9, %v52_v10 }
  0x24   :  { %v61_v23 = vld [vmem:[#allocation2] sm:$0x1] }
  0x2c   :  { %v112_v13 = vpop.eup %111 }
  0x2d   :  { %v114_v14 = vpop.eup %113  ;;  %v59_v15 = vsub.f32 %v53_v11, %v112_v13 }
  0x2e   :  { %v60_v16 = vsub.f32 %v54_v12, %v114_v14 }
  0x30   :  { %v62_v17 = vadd.f32 %v60_v16, %v59_v15 }
  0x32   :  { %v63_v18 = vrot.slane %v62_v17, 4 }
  0x34   :  { %v64_v19 = vadd.f32 %v63_v18, %v62_v17 }
  0x36   :  { %v65_v20 = vrot.slane %v64_v19, 2 }
  0x38   :  { %v66_v21 = vadd.f32 %v65_v20, %v64_v19 }
  0x3a   :  { %v67_v22 = vrot.slane %v66_v21, 1 }
  0x3c   :  { %v68_v24 = vadd.f32 %v67_v22, %v66_v21 }
  0x3e   :  { %v69_v25 = vadd.f32 %v68_v24, %v61_v23 }
  0x40   :  { %70 = vst [vmem:[#allocation2] sm:$0x1] %v69_v25 }
  0x47   :  { %v74_v26 = vld [vmem:[#allocation2] sm:$0x1] }
  0x48   :  { %v76_v27 = vsel %vm75_vm0, %v74_v26, 0.0 }
  0x49   :  { %77 = vadd.xlane.f32.xlu0 %v76_v27 }
  0xd2   :  { %v78_v28 = vpop.xlane.xlu0 %77 }
  0xd3   :  { %v79_v29 = vrot.slane %v78_v28, 4 }
  0xd5   :  { %v80_v30 = vadd.f32 %v79_v29, %v78_v28 }
  0xd7   :  { %v81_v31 = vrot.slane %v80_v30, 2 }
  0xd9   :  { %v82_v32 = vadd.f32 %v81_v31, %v80_v30 }
  0xdb   :  { %v83_v33 = vrot.slane %v82_v32, 1 }
  0xdd   :  { %v84_v34 = vadd.f32 %v83_v33, %v82_v32 }
  0xdf   :  { %103 = vpush %v84_v34 }
 0x110   :  { %s104_s0 = spop %103 }
 0x111   :  { %87 = sst [smem:[#allocation8]] %s104_s0 }
 0x112   :  { %95 = dma.smem_to_hbm %s174_s1, 16, %s201_s2, [#allocation5]  }
 0x113   :  { %167 = dma.done.wait [#allocation5], 16  }
 0x114   :  { %168 = vsyncadd [#allocation5], 4294967280 }
 0x115   :  { %99 = sfence }
 0x116   :  { %100 = vsyncpa [#allocation4], 1 }
 0x117   :  { %101 = vsyncpa [#allocation7], 1 }
 0x118   :  { %102 = vsyncpa [#allocation5], 1 }

</bundles_post_ra>
